<compile_context>
chip_gen: v5e
topology: v5e:2x2
jax: 0.10.0
libtpu: 0.0.40
codegen_flags: <defaults>
</compile_context>

<pallas_src>
import functools
import math

import jax
import jax.numpy as jnp
from jax.experimental import pallas as pl
from jax.experimental.pallas import tpu as pltpu


# ----------------------------- helpers --------------------------------------


def _round_up(x: int, m: int) -> int:
    return ((x + m - 1) // m) * m


def _sublane(dtype) -> int:
    """Minimum second-minor tile dim for the dtype (f32:8, bf16:16, int8/fp8:32)."""
    itemsize = jnp.dtype(dtype).itemsize
    return {4: 8, 2: 16, 1: 32}.get(itemsize, 8)


def _pick_tile(dim: int, unit: int, max_tile: int, waste_tol: float = 1.0 / 16) -> int:
    """Pick a tile size (multiple of `unit`, <= max_tile) for a padded dim.

    Prefers the largest tile whose zero-pad waste is <= waste_tol of `dim`;
    otherwise falls back to the tile minimizing the padded extent (ties -> larger
    tile). `dim` is already a multiple of `unit`.
    """
    if dim <= max_tile:
        return dim
    candidates = list(range(unit, min(max_tile, dim) + 1, unit))
    ok = [t for t in candidates if _round_up(dim, t) - dim <= dim * waste_tol]
    if ok:
        return max(ok)
    return min(candidates, key=lambda t: (_round_up(dim, t), -t))


def init_linear_params(key, in_features, out_features, dtype=jnp.float32):
    """torch.nn.Linear default init: kaiming-uniform weight, uniform bias,
    both with bound 1/sqrt(fan_in)."""
    k_w, k_b = jax.random.split(key)
    bound = 1.0 / math.sqrt(in_features)
    weight = jax.random.uniform(
        k_w, (out_features, in_features), dtype=dtype, minval=-bound, maxval=bound
    )
    bias = jax.random.uniform(
        k_b, (out_features,), dtype=dtype, minval=-bound, maxval=bound
    )
    return weight, bias


# ----------------------------- kernels --------------------------------------


def _linear_kernel_whole_k(x_ref, w_ref, b_ref, o_ref):
    """Whole-K path: one MXU matmul per (i, j) output tile, no accumulator.

    x_ref: (tm, K)   activation tile
    w_ref: (K,  tn)  weight tile, already in (in, out) layout
    b_ref: (1,  tn)  bias tile
    o_ref: (tm, tn)  output tile
    """
    acc = jnp.dot(x_ref[...], w_ref[...], preferred_element_type=jnp.float32)
    o_ref[...] = (acc + b_ref[...].astype(jnp.float32)).astype(o_ref.dtype)


def _linear_kernel_ksplit(x_ref, w_ref, b_ref, o_ref, acc_ref):
    """K-split path: accumulate over the innermost ('arbitrary') K grid axis.

    x_ref: (tm, tk), w_ref: (tk, tn), b_ref: (1, tn), o_ref: (tm, tn),
    acc_ref: (tm, tn) f32 VMEM scratch persisting across K steps.
    """
    kk = pl.program_id(2)

    @pl.when(kk == 0)
    def _():
        acc_ref[...] = jnp.zeros_like(acc_ref)

    acc_ref[...] += jnp.dot(
        x_ref[...], w_ref[...], preferred_element_type=jnp.float32
    )

    @pl.when(kk == pl.num_programs(2) - 1)
    def _():
        o_ref[...] = (acc_ref[...] + b_ref[...].astype(jnp.float32)).astype(o_ref.dtype)


# ----------------------------- wrapper --------------------------------------


def prepare_linear_params(
    weight,
    bias,
    *,
    tn_max: int = 512,
    tk_max: int = 1024,
    tm_max: int = 512,
    whole_k_vmem_budget: int = 32 * 1024 * 1024,
):
    """One-time prep: transpose PyTorch-layout (out, in) weight to (in, out),
    zero-pad both weight and bias to tile multiples, and fix tn/tk.

    Hoisted out of the per-call hot path so repeated forwards never re-read the
    whole weight matrix just to pad/transpose it.
    """
    n, k = weight.shape
    dtype = weight.dtype
    itemsize = jnp.dtype(dtype).itemsize

    np_ = _round_up(n, 128)
    kp = _round_up(k, 128)
    tn = np_ if np_ <= tn_max else _pick_tile(np_, 128, tn_max)

    # Whole-K (no reduction axis / accumulator) if the double-buffered tiles fit
    # a conservative VMEM budget even at the largest tm we would ever choose.
    whole_k_bytes = (
        2 * (tm_max * kp + kp * tn + tn) * itemsize + 2 * tm_max * tn * itemsize
    )
    tk = kp if whole_k_bytes <= whole_k_vmem_budget else _pick_tile(kp, 128, tk_max)

    kpad = _round_up(kp, tk)
    npad = _round_up(np_, tn)

    w_kn = jnp.pad(weight.T, ((0, kpad - k), (0, npad - n)))
    b_row = jnp.pad(bias.reshape(1, -1), ((0, 0), (0, npad - n)))
    return {"w_kn": w_kn, "b_row": b_row, "n_out": n, "tn": tn, "tk": tk}


def _choose_tm(m: int, dtype, *, n_blocks: int, tm_max: int = 512) -> int:
    sub = _sublane(dtype)
    mp = _round_up(m, sub)
    tm = mp if mp <= tm_max else _pick_tile(mp, sub, tm_max)
    # If the output grid would collapse to a single block, split M in two so
    # v7x's 2 TensorCores both get work (near-free on single-TC v5e/v6e).
    if n_blocks * (_round_up(mp, tm) // tm) == 1 and mp >= 256:
        tm = _round_up((mp + 1) // 2, sub)
    return tm


@functools.partial(jax.jit, static_argnames=("n_out", "tm", "tn", "tk"))
def _linear_forward(x, w_kn, b_row, *, n_out, tm, tn, tk):
    """y[:m, :n_out] where y = x_pad @ w_kn + b_row, tiled on the MXU."""
    if x.dtype != w_kn.dtype:
        x = x.astype(w_kn.dtype)

    m, k = x.shape
    kpad, npad = w_kn.shape
    mp = _round_up(m, tm)
    if mp != m or kpad != k:
        x = jnp.pad(x, ((0, mp - m), (0, kpad - k)))

    grid_m, grid_n, grid_k = mp // tm, npad // tn, kpad // tk

    itemsize = jnp.dtype(x.dtype).itemsize
    cost = pl.CostEstimate(
        flops=2 * mp * npad * kpad,
        transcendentals=0,
        bytes_accessed=(
            grid_n * mp * kpad * itemsize      # x re-read once per N block
            + grid_m * kpad * npad * itemsize  # weight re-read once per M block
            + grid_m * npad * itemsize         # bias
            + mp * npad * itemsize             # output
        ),
    )

    vmem_bytes = (
        2 * (tm * tk + tk * tn + tn) * itemsize
        + 2 * tm * tn * itemsize
        + (tm * tn * 4 if grid_k > 1 else 0)
    )
    vmem_limit = min(max(vmem_bytes + (4 << 20), 32 << 20), 48 << 20)

    if grid_k == 1:
        out = pl.pallas_call(
            _linear_kernel_whole_k,
            out_shape=jax.ShapeDtypeStruct((mp, npad), x.dtype),
            grid_spec=pltpu.PrefetchScalarGridSpec(
                num_scalar_prefetch=0,
                grid=(grid_m, grid_n),
                in_specs=[
                    pl.BlockSpec((tm, tk), lambda i, j: (i, 0)),   # x tile
                    pl.BlockSpec((tk, tn), lambda i, j: (0, j)),   # weight (K, N)
                    pl.BlockSpec((1, tn), lambda i, j: (0, j)),    # bias
                ],
                out_specs=pl.BlockSpec((tm, tn), lambda i, j: (i, j)),
            ),
            compiler_params=pltpu.CompilerParams(
                dimension_semantics=("parallel", "parallel"),
                vmem_limit_bytes=vmem_limit,
            ),
            cost_estimate=cost,
        )(x, w_kn, b_row)
    else:
        out = pl.pallas_call(
            _linear_kernel_ksplit,
            out_shape=jax.ShapeDtypeStruct((mp, npad), x.dtype),
            grid_spec=pltpu.PrefetchScalarGridSpec(
                num_scalar_prefetch=0,
                grid=(grid_m, grid_n, grid_k),
                in_specs=[
                    pl.BlockSpec((tm, tk), lambda i, j, kk: (i, kk)),
                    pl.BlockSpec((tk, tn), lambda i, j, kk: (kk, j)),
                    pl.BlockSpec((1, tn), lambda i, j, kk: (0, j)),
                ],
                out_specs=pl.BlockSpec((tm, tn), lambda i, j, kk: (i, j)),
                scratch_shapes=[pltpu.VMEM((tm, tn), jnp.float32)],
            ),
            compiler_params=pltpu.CompilerParams(
                dimension_semantics=("parallel", "parallel", "arbitrary"),
                vmem_limit_bytes=vmem_limit,
            ),
            cost_estimate=cost,
        )(x, w_kn, b_row)

    return out[:m, :n_out]


def lazily_initialized_linear(x, weight, bias):
    """One-shot functional form: y = x @ weight.T + bias (PyTorch layout).

    Prepares (pads + transposes) the weight on every call; prefer the
    LazilyInitializedLinear class / prepare_linear_params for repeated calls.
    """
    prepared = prepare_linear_params(weight, bias)
    tm = _choose_tm(
        x.shape[0],
        prepared["w_kn"].dtype,
        n_blocks=prepared["w_kn"].shape[1] // prepared["tn"],
    )
    return _linear_forward(
        x,
        prepared["w_kn"],
        prepared["b_row"],
        n_out=prepared["n_out"],
        tm=tm,
        tn=prepared["tn"],
        tk=prepared["tk"],
    )


class LazilyInitializedLinear:
    """JAX/Pallas port of the lazily-initialized torch.nn.Linear module.

    Parameters are built from x.shape[1] on the first call (mirroring the lazy
    nn.Linear construction) and the padded/transposed kernel-layout weight is
    cached, so subsequent calls do no per-call weight preprocessing.
    """

    def __init__(self, out_features, *, key=None, dtype=jnp.float32, tm_max=512):
        self.out_features = out_features
        self.dtype = dtype
        self.tm_max = tm_max
        self._key = key if key is not None else jax.random.PRNGKey(0)
        self._prepared = None
        self.weight = None  # PyTorch-layout (out, in), for inspection/reference
        self.bias = None

    def __call__(self, x):
        if self._prepared is None:
            in_features = x.shape[1]
            self.weight, self.bias = init_linear_params(
                self._key, in_features, self.out_features, self.dtype
            )
            # TODO(synk): torch's `.to(x.device)` has no Pallas equivalent; params
            # live wherever JAX places them (default TPU device).
            self._prepared = prepare_linear_params(self.weight, self.bias)
        p = self._prepared
        tm = _choose_tm(
            x.shape[0],
            p["w_kn"].dtype,
            n_blocks=p["w_kn"].shape[1] // p["tn"],
            tm_max=self.tm_max,
        )
        return _linear_forward(
            x, p["w_kn"], p["b_row"], n_out=p["n_out"], tm=tm, tn=p["tn"], tk=p["tk"]
        )


# ----------------------------- demo / checks --------------------------------


if __name__ == "__main__":
    key = jax.random.PRNGKey(0)
    k_x1, k_x1b, k_p1, k_x2, k_p2, k_x3, k_p3 = jax.random.split(key, 7)

    # 1) Typical lazy-init use: tiny batch; params built from x.shape[1] on the
    #    first forward, padded/transposed weight cached for later calls.
    x1 = jax.random.normal(k_x1, (8, 32), dtype=jnp.float32)
    layer = LazilyInitializedLinear(64, key=k_p1)
    y1 = jax.block_until_ready(layer(x1))
    ref1 = x1 @ layer.weight.T + layer.bias
    assert y1.shape == (8, 64)
    assert jnp.allclose(y1, ref1, atol=1e-5, rtol=1e-5)

    # Second call reuses the cached kernel-layout params (no re-pad/transpose).
    x1b = jax.random.normal(k_x1b, (8, 32), dtype=jnp.float32)
    y1b = jax.block_until_ready(layer(x1b))
    assert jnp.allclose(y1b, x1b @ layer.weight.T + layer.bias, atol=1e-5, rtol=1e-5)

    # 2) Multi-block M, whole-K path: K=640 is NOT padded to 1024 and M=384 is
    #    NOT padded to 512 (the old tile clamp's 1.6x / 1.33x waste).
    x2 = jax.random.normal(k_x2, (384, 640), dtype=jnp.float32)
    w2, b2 = init_linear_params(k_p2, 640, 384)
    y2 = jax.block_until_ready(lazily_initialized_linear(x2, w2, b2))
    ref2 = x2 @ w2.T + b2
    assert y2.shape == (384, 384)
    assert jnp.allclose(y2, ref2, atol=1e-4, rtol=1e-4)

    # 3) Large K forcing the K-split accumulator path (grid (2, 1, 5)).
    x3 = jax.random.normal(k_x3, (256, 5120), dtype=jnp.float32)
    w3, b3 = init_linear_params(k_p3, 5120, 512)
    y3 = jax.block_until_ready(lazily_initialized_linear(x3, w3, b3))
    ref3 = x3 @ w3.T + b3
    assert y3.shape == (256, 512)
    assert jnp.allclose(y3, ref3, atol=5e-3, rtol=5e-3)

    print("KERNEL_OK")
</pallas_src>

<mosaic_0001>
module attributes {stable_mosaic.version = 11 : i64} {
  func.func @_linear_kernel_whole_k(%arg0: i32, %arg1: i32, %arg2: memref<8x128xf32, #tpu.memory_space<vmem>>, %arg3: memref<128x128xf32, #tpu.memory_space<vmem>>, %arg4: memref<1x128xf32, #tpu.memory_space<vmem>>, %arg5: memref<8x128xf32, #tpu.memory_space<vmem>>) attributes {dimension_semantics = [#tpu.dimension_semantics<parallel>, #tpu.dimension_semantics<parallel>], iteration_bounds = array<i64: 1, 1>, scalar_prefetch = 0 : i64, scratch_operands = 0 : i64, tpu.core_type = #tpu.core_type<tc>, window_params = [{transform_indices = @transform_0, window_bounds = array<i64: 8, 128>}, {transform_indices = @transform_1, window_bounds = array<i64: 128, 128>}, {transform_indices = @transform_2, window_bounds = array<i64: 1, 128>}, {transform_indices = @transform_3, window_bounds = array<i64: 8, 128>}]} {
    %c0 = arith.constant 0 : index
    %c0_0 = arith.constant 0 : index
    %0 = vector.load %arg2[%c0, %c0_0] : memref<8x128xf32, #tpu.memory_space<vmem>>, vector<8x128xf32>
    %c0_1 = arith.constant 0 : index
    %c0_2 = arith.constant 0 : index
    %1 = vector.load %arg3[%c0_1, %c0_2] : memref<128x128xf32, #tpu.memory_space<vmem>>, vector<128x128xf32>
    %cst = arith.constant dense<0.000000e+00> : vector<8x128xf32>
    %2 = tpu.matmul %0, %1, %cst {dimension_numbers = #tpu.dot_dimension_numbers<[1], [0], [0], [1], [0, 0, 1, 1], [], []>} : vector<8x128xf32>, vector<128x128xf32>, vector<8x128xf32> -> vector<8x128xf32>
    %c0_3 = arith.constant 0 : index
    %c0_4 = arith.constant 0 : index
    %3 = vector.load %arg4[%c0_3, %c0_4] : memref<1x128xf32, #tpu.memory_space<vmem>>, vector<1x128xf32>
    %4 = vector.broadcast %3 : vector<1x128xf32> to vector<8x128xf32>
    %5 = arith.addf %2, %4 : vector<8x128xf32>
    %c0_5 = arith.constant 0 : index
    %c0_6 = arith.constant 0 : index
    %6 = vector.load %arg5[%c0_5, %c0_6] : memref<8x128xf32, #tpu.memory_space<vmem>>, vector<8x128xf32>
    tpu.vector_store %arg5[%c0_5, %c0_6], %5 {strides = array<i32>} : memref<8x128xf32, #tpu.memory_space<vmem>>, vector<8x128xf32>,
    return
  }
  func.func @transform_0(%arg0: i32, %arg1: i32) -> (i32, i32) {
    %c0_i32 = arith.constant 0 : i32
    %c0_i32_0 = arith.constant 0 : i32
    return %arg0, %c0_i32 : i32, i32
  }
  func.func @transform_1(%arg0: i32, %arg1: i32) -> (i32, i32) {
    %c0_i32 = arith.constant 0 : i32
    %c0_i32_0 = arith.constant 0 : i32
    return %c0_i32, %arg1 : i32, i32
  }
  func.func @transform_2(%arg0: i32, %arg1: i32) -> (i32, i32) {
    %c0_i32 = arith.constant 0 : i32
    %c0_i32_0 = arith.constant 0 : i32
    return %c0_i32, %arg1 : i32, i32
  }
  func.func @transform_3(%arg0: i32, %arg1: i32) -> (i32, i32) {
    %c0_i32 = arith.constant 0 : i32
    return %arg0, %arg1 : i32, i32
  }
}

</mosaic_0001>

<bundles_post_ra>
// kernel: _linear_forward.1
= control target key start
LH: loop header
LB: loop body
LE: loop exit
PB: predicated region body
PF: predicated region fallthrough
CT: control target
= control target key end

     0   :  { %8 = vsyncpa [#allocation3], 0  ;;  %s183_s0 = inlined_call_operand.vmem [shape: f32[8,128], index: 0, kind: input, shape index: {}]   ;;  %s184_s1 = inlined_call_operand.hbm [shape: f32[128,128], index: 1, kind: input, shape index: {}]   ;;  %s185_s2 = inlined_call_operand.vmem [shape: f32[1,128], index: 2, kind: input, shape index: {}]   ;;  %s186_s3 = inlined_call_operand.hbm [shape: f32[8,128], index: 3, kind: output, shape index: {}]  }
   0x1   :  { %9 = vsyncpa [#allocation4], 0  ;;  %s16_s14 = sshll.u32 %s184_s1, 4  ;;  %s147_s15 = smov [#allocation2]   ;;  %s17_s14 = int_to_ptr.hbm [resolvable:$true] %s16_s14 }
   0x2   :  { %s18_s16 = sshll.u32 %s147_s15, 4  ;;  %s148_s17 = smov 128   ;;  %s19_s16 = int_to_ptr.vmem [resolvable:$true] %s18_s16 }
   0x3   :  { %s149_s18 = smov 8  }
   0x4   :  { %24 = dma.hbm_to_vmem [thread:$0]  %s17_s14, 2048, %s19_s16, [#allocation3], %s148_s17, %s148_s17, %s149_s18  }
   0x5   :  { %143 = dma.done.wait [#allocation3], 2048  }
   0x6   :  { %144 = vsyncadd [#allocation3], 4294965248  ;;  %v47_v0 = vld [vmem:[#allocation2 + $0x78] sm:$0xff]  ;;  %v46_v1 = vld [vmem:[#allocation2 + $0x70] sm:$0xff]  ;;  %s150_s22 = smov [#allocation5]   ;;  %s80_s26 = sshll.u32 %s186_s3, 4  ;;  %s81_s26 = int_to_ptr.hbm [resolvable:$true] %s80_s26 }
   0x7   :  { %52 = vmatpush.msra.mxu0 %v47_v0  ;;  %v45_v2 = vld [vmem:[#allocation2 + $0x68] sm:$0xff]  ;;  %v44_v3 = vld [vmem:[#allocation2 + $0x60] sm:$0xff]  ;;  %v43_v4 = vld [vmem:[#allocation2 + $0x58] sm:$0xff]  ;;  %s78_s23 = sshll.u32 %s150_s22, 4  ;;  %s79_s23 = int_to_ptr.vmem [resolvable:$true] %s78_s23 }
   0x8   :  { %v42_v5 = vld [vmem:[#allocation2 + $0x50] sm:$0xff]  ;;  %v41_v6 = vld [vmem:[#allocation2 + $0x48] sm:$0xff]  ;;  %v40_v7 = vld [vmem:[#allocation2 + $0x40] sm:$0xff] }
   0x9   :  { %53 = vmatpush.msra.mxu0 %v46_v1  ;;  %v39_v8 = vld [vmem:[#allocation2 + $0x38] sm:$0xff]  ;;  %v38_v9 = vld [vmem:[#allocation2 + $0x30] sm:$0xff]  ;;  %v37_v10 = vld [vmem:[#allocation2 + $0x28] sm:$0xff] }
   0xa   :  { %v36_v11 = vld [vmem:[#allocation2 + $0x20] sm:$0xff]  ;;  %v35_v12 = vld [vmem:[#allocation2 + $0x18] sm:$0xff]  ;;  %v34_v13 = vld [vmem:[#allocation2 + $0x10] sm:$0xff] }
   0xb   :  { %54 = vmatpush.msra.mxu0 %v45_v2  ;;  %v33_v14 = vld [vmem:[#allocation2 + $0x8] sm:$0xff]  ;;  %v32_v15 = vld [vmem:[#allocation2] sm:$0xff] }
   0xc   :  { %v31_v16 = vld [vmem:[%s183_s0] sm:$0xff] }
   0xd   :  { %55 = vmatpush.msra.mxu0 %v44_v3  ;;  %v94_v17 = vld [vmem:[%s185_s2] ss:$0 sm:$0xff] }
   0xf   :  { %56 = vmatpush.msra.mxu0 %v43_v4 }
  0x11   :  { %57 = vmatpush.msra.mxu0 %v42_v5 }
  0x13   :  { %58 = vmatpush.msra.mxu0 %v41_v6 }
  0x15   :  { %59 = vmatpush.msra.mxu0 %v40_v7 }
  0x17   :  { %60 = vmatpush.msra.mxu0 %v39_v8 }
  0x19   :  { %61 = vmatpush.msra.mxu0 %v38_v9 }
  0x1b   :  { %62 = vmatpush.msra.mxu0 %v37_v10 }
  0x1d   :  { %63 = vmatpush.msra.mxu0 %v36_v11 }
  0x1f   :  { %64 = vmatpush.msra.mxu0 %v35_v12 }
  0x21   :  { %65 = vmatpush.msra.mxu0 %v34_v13 }
  0x23   :  { %66 = vmatpush.msra.mxu0 %v33_v14 }
  0x25   :  { %67 = vmatpush.msra.mxu0 %v32_v15 }
  0x26   :  { %68 = vmatmul.f32.vlgmr.msra.gmra.mxu0 %v31_v16 }
  0xa3   :  { %v69_v18 = vpop.f32.mrf.mxu0 }
  0xa4   :  { %v70_v19 = vadd.f32 %v94_v17, %v69_v18 }
  0xa6   :  { %72 = vst [vmem:[#allocation5] sm:$0xff] %v70_v19 }
  0xa7   :  { %83 = dma.vmem_to_hbm [thread:$0]  %s79_s23, 128, %s81_s26, [#allocation4]  }
  0xa8   :  { %145 = dma.done.wait [#allocation4], 128  }
  0xa9   :  { %146 = vsyncadd [#allocation4], 4294967168 }
  0xaa   :  { %88 = vsyncpa [#allocation3], 1 }
  0xab   :  { %89 = vsyncpa [#allocation4], 1 }

</bundles_post_ra>
